<compile_context>
chip_gen: v7x
topology: tpu7x:2x2x1
jax: 0.10.0
libtpu: 0.0.40
codegen_flags: <defaults>
</compile_context>

<pallas_src>
import functools

import jax
import jax.numpy as jnp
from jax.experimental import pallas as pl
from jax.experimental.pallas import tpu as pltpu

HIDDEN_SIZE = 32


def actor_kernel(x_ref, wp_ref, bp_ref, out_ref, *, in_dim, hidden, out_dim):
    H = hidden
    x = x_ref[...]                                   # (TB, in_dim), mxu dtype

    # Static slices of the packed weight / bias blocks (layout set by pack_params).
    w1 = wp_ref[0:in_dim, 0:H]                       # (in_dim, H)
    w2 = wp_ref[0:H, H:2 * H]                        # (H, H)
    wh = wp_ref[0:H, 2 * H:2 * H + 2 * out_dim]      # (H, 2*out) = [wm | wv]

    b1 = bp_ref[:, 0:H]                              # (1, H)  f32
    b2 = bp_ref[:, H:2 * H]                          # (1, H)  f32
    bh = bp_ref[:, 2 * H:2 * H + 2 * out_dim]        # (1, 2*out) f32

    # net: Linear -> ReLU -> Linear -> ReLU   (MXU in input dtype, f32 accumulate,
    # elementwise in f32)
    h1 = jnp.dot(x, w1, preferred_element_type=jnp.float32) + b1
    h1 = jnp.maximum(h1, 0.0)
    h2 = jnp.dot(h1.astype(x.dtype), w2, preferred_element_type=jnp.float32) + b2
    h2 = jnp.maximum(h2, 0.0)

    # fused heads: one matmul producing [mean_pre | var_pre]
    z = jnp.dot(h2.astype(x.dtype), wh, preferred_element_type=jnp.float32) + bh

    # tanh on first out_dim columns, stable softplus on the rest; single store.
    col = jax.lax.broadcasted_iota(jnp.int32, z.shape, 1)
    tanh_z = jnp.tanh(z)
    softplus_z = jnp.maximum(z, 0.0) + jnp.log1p(jnp.exp(-jnp.abs(z)))
    out_ref[...] = jnp.where(col < out_dim, tanh_z, softplus_z)


def pack_params(params, mxu_dtype):
    """Pack all weights into one padded array and all biases into one row."""
    w1, b1, w2, b2, wm, bm, wv, bv = params
    in_dim, H = w1.shape
    out_dim = wm.shape[1]
    rows = max(in_dim, H)
    cols = 2 * H + 2 * out_dim

    wp = jnp.zeros((rows, cols), mxu_dtype)
    wp = wp.at[:in_dim, 0:H].set(w1.astype(mxu_dtype))
    wp = wp.at[:H, H:2 * H].set(w2.astype(mxu_dtype))
    wp = wp.at[:H, 2 * H:2 * H + out_dim].set(wm.astype(mxu_dtype))
    wp = wp.at[:H, 2 * H + out_dim:2 * H + 2 * out_dim].set(wv.astype(mxu_dtype))

    bp = jnp.concatenate([b1, b2, bm, bv], axis=1).astype(jnp.float32)
    return wp, bp


def actor_forward(x, params, *, mxu_dtype=jnp.float32, block_batch=256):
    """x: (B, input_shape). Returns (mean, variance), each (B, output_shape), f32."""
    in_dim = params[0].shape[0]
    out_dim = params[4].shape[1]
    H = HIDDEN_SIZE

    wp, bp = pack_params(params, mxu_dtype)

    B = x.shape[0]
    # batch tile: multiple of 8 (f32 sublane); pad B so the grid divides evenly
    b8 = ((B + 7) // 8) * 8
    TB = min(((block_batch + 7) // 8) * 8, b8)
    Bpad = ((b8 + TB - 1) // TB) * TB
    if Bpad != B:
        x = jnp.pad(x, ((0, Bpad - B), (0, 0)))
    x = x.astype(mxu_dtype)

    kernel = functools.partial(actor_kernel, in_dim=in_dim, hidden=H, out_dim=out_dim)

    out = pl.pallas_call(
        kernel,
        out_shape=jax.ShapeDtypeStruct((Bpad, 2 * out_dim), jnp.float32),
        grid=(Bpad // TB,),
        in_specs=[
            pl.BlockSpec((TB, in_dim), lambda i: (i, 0)),       # x tiles, pipelined
            pl.BlockSpec(wp.shape, lambda i: (0, 0)),            # weights, VMEM-resident
            pl.BlockSpec(bp.shape, lambda i: (0, 0)),            # biases,  VMEM-resident
        ],
        out_specs=pl.BlockSpec((TB, 2 * out_dim), lambda i: (i, 0)),
        compiler_params=pltpu.CompilerParams(
            dimension_semantics=("parallel",)),                  # v7x: shards over 2 TCs
    )(x, wp, bp)

    out = out[:B]
    return out[:, :out_dim], out[:, out_dim:]


def init_params(key, input_shape, output_shape):
    """Deterministic init mimicking PyTorch's uniform(-1/sqrt(fan_in), 1/sqrt(fan_in))."""
    def linear(key, fan_in, fan_out):
        kw, kb = jax.random.split(key)
        bound = 1.0 / jnp.sqrt(float(fan_in))
        w = jax.random.uniform(kw, (fan_in, fan_out), jnp.float32, -bound, bound)
        b = jax.random.uniform(kb, (1, fan_out), jnp.float32, -bound, bound)
        return w, b

    k1, k2, k3, k4 = jax.random.split(key, 4)
    w1, b1 = linear(k1, input_shape, HIDDEN_SIZE)
    w2, b2 = linear(k2, HIDDEN_SIZE, HIDDEN_SIZE)
    wm, bm = linear(k3, HIDDEN_SIZE, output_shape)
    wv, bv = linear(k4, HIDDEN_SIZE, output_shape)
    return (w1, b1, w2, b2, wm, bm, wv, bv)


def _reference(x, params):
    w1, b1, w2, b2, wm, bm, wv, bv = params
    h = jnp.maximum(x @ w1 + b1, 0.0)
    h = jnp.maximum(h @ w2 + b2, 0.0)
    return jnp.tanh(h @ wm + bm), jax.nn.softplus(h @ wv + bv)


if __name__ == "__main__":
    key = jax.random.PRNGKey(0)
    k_params, k_x, k_x2 = jax.random.split(key, 3)

    batch = 8
    input_shape = 16
    output_shape = 4

    params = init_params(k_params, input_shape, output_shape)
    x = jax.random.normal(k_x, (batch, input_shape), jnp.float32)

    # f32 path (exact module semantics)
    mean, var = actor_forward(x, params)
    jax.block_until_ready((mean, var))
    mean_r, var_r = _reference(x, params)
    assert jnp.allclose(mean, mean_r, atol=1e-5), "mean mismatch"
    assert jnp.allclose(var, var_r, atol=1e-5), "variance mismatch"

    # larger ragged batch: exercises the batch grid (padding + parallel axis)
    x2 = jax.random.normal(k_x2, (200, input_shape), jnp.float32)
    mean2, var2 = actor_forward(x2, params, block_batch=64)
    jax.block_until_ready((mean2, var2))
    mean2_r, var2_r = _reference(x2, params)
    assert jnp.allclose(mean2, mean2_r, atol=1e-5), "mean mismatch (grid)"
    assert jnp.allclose(var2, var2_r, atol=1e-5), "variance mismatch (grid)"

    # bf16 MXU inputs (v6e/v7x fast path), f32 accumulate + f32 elementwise
    mean_bf, var_bf = actor_forward(x, params, mxu_dtype=jnp.bfloat16)
    jax.block_until_ready((mean_bf, var_bf))
    assert jnp.allclose(mean_bf, mean_r, atol=1e-1), "mean mismatch (bf16)"
    assert jnp.allclose(var_bf, var_r, atol=1e-1), "variance mismatch (bf16)"

    print("KERNEL_OK")
</pallas_src>

<mosaic_0001>
module attributes {stable_mosaic.version = 11 : i64} {
  func.func @actor_kernel(%arg0: i32, %arg1: memref<8x16xf32, #tpu.memory_space<vmem>>, %arg2: memref<32x72xf32, #tpu.memory_space<vmem>>, %arg3: memref<1x72xf32, #tpu.memory_space<vmem>>, %arg4: memref<8x8xf32, #tpu.memory_space<vmem>>) attributes {dimension_semantics = [#tpu.dimension_semantics<parallel>], iteration_bounds = array<i64: 1>, scalar_prefetch = 0 : i64, scratch_operands = 0 : i64, tpu.core_type = #tpu.core_type<tc>, window_params = [{transform_indices = @transform_0, window_bounds = array<i64: 8, 16>}, {pipeline_mode = #tpu.pipeline_mode<synchronous>, transform_indices = @transform_1, window_bounds = array<i64: 32, 72>}, {pipeline_mode = #tpu.pipeline_mode<synchronous>, transform_indices = @transform_2, window_bounds = array<i64: 1, 72>}, {transform_indices = @transform_3, window_bounds = array<i64: 8, 8>}]} {
    %c0 = arith.constant 0 : index
    %c0_0 = arith.constant 0 : index
    %0 = vector.load %arg1[%c0, %c0_0] : memref<8x16xf32, #tpu.memory_space<vmem>>, vector<8x16xf32>
    %c0_1 = arith.constant 0 : index
    %c0_2 = arith.constant 0 : index
    %1 = vector.load %arg2[%c0_1, %c0_2] : memref<32x72xf32, #tpu.memory_space<vmem>>, vector<16x32xf32>
    %c0_3 = arith.constant 0 : index
    %c32 = arith.constant 32 : index
    %2 = vector.load %arg2[%c0_3, %c32] : memref<32x72xf32, #tpu.memory_space<vmem>>, vector<32x32xf32>
    %c0_4 = arith.constant 0 : index
    %c64 = arith.constant 64 : index
    %3 = vector.load %arg2[%c0_4, %c64] : memref<32x72xf32, #tpu.memory_space<vmem>>, vector<32x8xf32>
    %c0_5 = arith.constant 0 : index
    %c0_6 = arith.constant 0 : index
    %4 = vector.load %arg3[%c0_5, %c0_6] : memref<1x72xf32, #tpu.memory_space<vmem>>, vector<1x32xf32>
    %c0_7 = arith.constant 0 : index
    %c32_8 = arith.constant 32 : index
    %5 = vector.load %arg3[%c0_7, %c32_8] : memref<1x72xf32, #tpu.memory_space<vmem>>, vector<1x32xf32>
    %c0_9 = arith.constant 0 : index
    %c64_10 = arith.constant 64 : index
    %6 = vector.load %arg3[%c0_9, %c64_10] : memref<1x72xf32, #tpu.memory_space<vmem>>, vector<1x8xf32>
    %cst = arith.constant dense<0.000000e+00> : vector<8x32xf32>
    %7 = tpu.matmul %0, %1, %cst {dimension_numbers = #tpu.dot_dimension_numbers<[1], [0], [0], [1], [0, 0, 1, 1], [], []>} : vector<8x16xf32>, vector<16x32xf32>, vector<8x32xf32> -> vector<8x32xf32>
    %8 = vector.broadcast %4 : vector<1x32xf32> to vector<8x32xf32>
    %9 = arith.addf %7, %8 : vector<8x32xf32>
    %cst_11 = arith.constant 0.000000e+00 : f32
    %10 = vector.broadcast %cst_11 : f32 to vector<8x32xf32>
    %11 = arith.maximumf %9, %10 : vector<8x32xf32>
    %cst_12 = arith.constant dense<0.000000e+00> : vector<8x32xf32>
    %12 = tpu.matmul %11, %2, %cst_12 {dimension_numbers = #tpu.dot_dimension_numbers<[1], [0], [0], [1], [0, 0, 1, 1], [], []>} : vector<8x32xf32>, vector<32x32xf32>, vector<8x32xf32> -> vector<8x32xf32>
    %13 = vector.broadcast %5 : vector<1x32xf32> to vector<8x32xf32>
    %14 = arith.addf %12, %13 : vector<8x32xf32>
    %cst_13 = arith.constant 0.000000e+00 : f32
    %15 = vector.broadcast %cst_13 : f32 to vector<8x32xf32>
    %16 = arith.maximumf %14, %15 : vector<8x32xf32>
    %cst_14 = arith.constant dense<0.000000e+00> : vector<8x8xf32>
    %17 = tpu.matmul %16, %3, %cst_14 {dimension_numbers = #tpu.dot_dimension_numbers<[1], [0], [0], [1], [0, 0, 1, 1], [], []>} : vector<8x32xf32>, vector<32x8xf32>, vector<8x8xf32> -> vector<8x8xf32>
    %18 = vector.broadcast %6 : vector<1x8xf32> to vector<8x8xf32>
    %19 = arith.addf %17, %18 : vector<8x8xf32>
    %20 = tpu.iota {dimensions = array<i32: 1>} : vector<8x8xi32>
    %21 = math.tanh %19 : vector<8x8xf32>
    %cst_15 = arith.constant 0.000000e+00 : f32
    %22 = vector.broadcast %cst_15 : f32 to vector<8x8xf32>
    %23 = arith.maximumf %19, %22 : vector<8x8xf32>
    %24 = math.absf %19 : vector<8x8xf32>
    %cst_16 = arith.constant 0.000000e+00 : f32
    %25 = vector.broadcast %cst_16 : f32 to vector<8x8xf32>
    %26 = arith.subf %25, %24 : vector<8x8xf32>
    %27 = math.exp %26 : vector<8x8xf32>
    %28 = math.log1p %27 : vector<8x8xf32>
    %29 = arith.addf %23, %28 : vector<8x8xf32>
    %c4_i32 = arith.constant 4 : i32
    %30 = vector.broadcast %c4_i32 : i32 to vector<8x8xi32>
    %31 = arith.cmpi slt, %20, %30 : vector<8x8xi32>
    %32 = arith.select %31, %21, %29 : vector<8x8xi1>, vector<8x8xf32>
    %c0_17 = arith.constant 0 : index
    %c0_18 = arith.constant 0 : index
    %33 = vector.load %arg4[%c0_17, %c0_18] : memref<8x8xf32, #tpu.memory_space<vmem>>, vector<8x8xf32>
    tpu.vector_store %arg4[%c0_17, %c0_18], %32 {strides = array<i32>} : memref<8x8xf32, #tpu.memory_space<vmem>>, vector<8x8xf32>,
    return
  }
  func.func @transform_0(%arg0: i32) -> (i32, i32) {
    %c0_i32 = arith.constant 0 : i32
    %c0_i32_0 = arith.constant 0 : i32
    return %arg0, %c0_i32 : i32, i32
  }
  func.func @transform_1(%arg0: i32) -> (i32, i32) {
    %c0_i32 = arith.constant 0 : i32
    %c0_i32_0 = arith.constant 0 : i32
    %c0_i32_1 = arith.constant 0 : i32
    return %c0_i32, %c0_i32_0 : i32, i32
  }
  func.func @transform_2(%arg0: i32) -> (i32, i32) {
    %c0_i32 = arith.constant 0 : i32
    %c0_i32_0 = arith.constant 0 : i32
    %c0_i32_1 = arith.constant 0 : i32
    return %c0_i32, %c0_i32_0 : i32, i32
  }
  func.func @transform_3(%arg0: i32) -> (i32, i32) {
    %c0_i32 = arith.constant 0 : i32
    %c0_i32_0 = arith.constant 0 : i32
    return %arg0, %c0_i32 : i32, i32
  }
}

</mosaic_0001>

<bundles_post_ra>
// kernel: tpu_custom_call.1
= control target key start
LH: loop header
LB: loop body
LE: loop exit
PB: predicated region body
PF: predicated region fallthrough
CT: control target
= control target key end

     0   :  { %8 = vsyncpa [#allocation3], 0  ;;  %s596_s0 = inlined_call_operand.hbm [shape: f32[8,16], index: 0, kind: input, shape index: {}]   ;;  %s597_s1 = inlined_call_operand.hbm [shape: f32[32,72], index: 1, kind: input, shape index: {}]   ;;  %s598_s2 = inlined_call_operand.vmem [shape: f32[1,72], index: 2, kind: input, shape index: {}]   ;;  %s599_s3 = inlined_call_operand.hbm [shape: f32[8,8], index: 3, kind: output, shape index: {}]  }
   0x1   :  { %9 = vsyncpa [#allocation6], 0 }
   0x2   :  { %10 = vsyncpa [#allocation4], 0  ;;  %s517_s12 = smov [#allocation2]   ;;  %s518_s14 = smov [#allocation5]  }
   0x3   :  { %s17_s13 = sshll.u32 %s517_s12, 4  ;;  %s26_s15 = sshll.u32 %s518_s14, 4  ;;  %s18_s13 = int_to_ptr.vmem [resolvable:$true] %s17_s13  ;;  %s547_s15 = int_to_ptr.vmem [resolvable:$true] %s26_s15 }
   0x4   :  { %s445_s18 = scalar_lea.hbm %s596_s0, 128 }
   0x5   :  { %p446_p0 = scmp.ne.s32.totalorder %s596_s0, %s445_s18  ;;  %p449_p1 = scmp.lt.u32.totalorder %s445_s18, %s596_s0 }
   0x7   :  { %p451_p2 = pnand %p449_p1, %p446_p0 }
   0x9   :  { %454 = shalt.err (!%p451_p2)
}
   0xa   :  { %s455_s23 = scalar_lea.vmem %s18_s13, 128  ;;  %p460_p4 = scmp.lt.s32.totalorder %s18_s13, %s18_s13 }
   0xb   :  { %p456_p3 = scmp.ne.s32.totalorder %s18_s13, %s455_s23  ;;  %p461_p5 = scmp.lt.s32.totalorder %s455_s23, %s455_s23 }
   0xd   :  { %p462_p6 = por %p461_p5, %p460_p4 }
   0xf   :  { %p463_p7 = pnand %p462_p6, %p456_p3 }
  0x11   :  { %466 = shalt.err (!%p463_p7)
}
  0x12   :  { %20 = dma.hbm_to_vmem [thread:$0]  %s596_s0, 128, %s18_s13, [#allocation3]  }
  0x13   :  { %s467_s28 = scalar_lea.hbm %s597_s1, 512 }
  0x14   :  { %p468_p8 = scmp.ne.s32.totalorder %s597_s1, %s467_s28  ;;  %p471_p9 = scmp.lt.u32.totalorder %s467_s28, %s597_s1 }
  0x16   :  { %p473_p10 = pnand %p471_p9, %p468_p8 }
  0x18   :  { %476 = shalt.err (!%p473_p10)
}
  0x19   :  { %s477_s6 = scalar_lea.vmem %s547_s15, 512  ;;  %p482_p12 = scmp.lt.s32.totalorder %s547_s15, %s547_s15 }
  0x1a   :  { %p478_p11 = scmp.ne.s32.totalorder %s547_s15, %s477_s6  ;;  %p483_p13 = scmp.lt.s32.totalorder %s477_s6, %s477_s6 }
  0x1c   :  { %p484_p0 = por %p483_p13, %p482_p12 }
  0x1e   :  { %p485_p1 = pnand %p484_p0, %p478_p11 }
  0x20   :  { %488 = shalt.err (!%p485_p1)
}
  0x21   :  { %s519_s0 = smov 128   ;;  %s520_s7 = smov 8  }
  0x22   :  { %32 = dma.hbm_to_vmem [thread:$0]  %s597_s1, 512, %s547_s15, [#allocation6], %s519_s0, %s519_s0, %s520_s7  }
  0x23   :  { %511 = dma.done.wait [#allocation3], 128  }
  0x24   :  { %512 = vsyncadd [#allocation3], 4294967168 }
  0x25   :  { %513 = dma.done.wait [#allocation6], 512  }
  0x26   :  { %514 = vsyncadd [#allocation6], 4294966784  ;;  %v521_v0 = vmov 0.0|0.0   ;;  %vm522_vm0 = vmmov 0   ;;  %v523_v1 = vmov 0.0   ;;  %v42_v2 = vld [vmem:[#allocation5] sm:$0xff]  ;;  %v310_v46 = vlaneseq }
  0x27   :  { %394 = vmatprep.subr.bf16.mxu0 %v521_v0  ;;  %369 = vmatprep.mubr.msk.f32.mxu0 %vm522_vm0, %v523_v1  ;;  %v43_v3 = vld [vmem:[#allocation5 + $0x8] sm:$0xff]  ;;  %v44_v6 = vld [vmem:[#allocation5 + $0x10] sm:$0xff]  ;;  %v45_v7 = vld [vmem:[#allocation5 + $0x18] sm:$0xff]  ;;  %vm53_vm1 = vcmask 130048   ;;  %s524_s1 = smov 96   ;;  %s525_s12 = smov 64  }
  0x28   :  { %397 = vmatprep.subr.bf16.mxu1 %v521_v0  ;;  %380 = vmatprep.mubr.msk.f32.mxu1 %vm522_vm0, %v523_v1  ;;  %v395_v4 = vpack.c.bf16 %v43_v3, %v42_v2  ;;  %v419_v5 = vpack.i.bf16 %v43_v3, %v42_v2  ;;  %v41_v8 = vld [vmem:[#allocation2] sm:$0xff]  ;;  %v424_v9 = vpack.i.bf16 %v45_v7, %v44_v6  ;;  %vm147_vm2 = vcmask 261120  }
  0x29   :  { %v348_v10 = vld [vmem:[%s598_s2] ss:$0 sm:$0xff]  ;;  %v311_v49 = vand.u32 127, %v310_v46  ;;  %s526_s2 = smov [#allocation7]   ;;  %vm330_vm5 = vcmask 64512  }
  0x2a   :  { %396 = vmatpush3.bf16.msra.mxu0 %v395_v4  ;;  %420 = vrot.lane.b32.xlu0 %v419_v5, %s524_s1  ;;  %s338_s13 = sshll.u32 %s526_s2, 4  ;;  %s339_s13 = int_to_ptr.vmem [resolvable:$true] %s338_s13 }
  0x2b   :  { %403 = vmatprep.subr.bf16.mxu0 %v521_v0  ;;  %430 = vrot.lane.b32.xlu1 %v419_v5, %s525_s12  ;;  %vm328_vm4 = vcmp.lt.s32.totalorder %v311_v49, 4  ;;  %s489_s14 = scalar_lea.vmem %s339_s13, 128  ;;  %p494_p3 = scmp.lt.s32.totalorder %s339_s13, %s339_s13 }
  0x2c   :  { %p490_p2 = scmp.ne.s32.totalorder %s339_s13, %s489_s14  ;;  %p495_p4 = scmp.lt.s32.totalorder %s489_s14, %s489_s14 }
  0x2d   :  { %370 = vmatmul.mubr.msk.f32.vlgmr.msra.gmra.mrb[0].mxu0 %vm53_vm1, %v41_v8 }
  0x2e   :  { %425 = vrot.lane.b32.xlu0 %v424_v9, %s524_s1  ;;  %391 = vmatprep.mubr.msk.f32.mxu0 %vm522_vm0, %v523_v1  ;;  %p496_p5 = por %p495_p4, %p494_p3 }
  0x2f   :  { %435 = vrot.lane.b32.xlu1 %v424_v9, %s525_s12 }
  0x30   :  { %p497_p6 = pnand %p496_p5, %p490_p2 }
  0x32   :  { %144 = vrot.lane.b32.xlu0 %v348_v10, %s524_s1 }
  0x33   :  { %234 = vrot.lane.b32.xlu1 %v348_v10, %s525_s12 }
  0x9c   :  { %v421_v11 = vpop.permute.xlu0 %420 }
  0x9d   :  { %v423_v12 = vunpack.i.h.bf16 %v421_v11  ;;  %v422_v13 = vunpack.i.l.bf16 %v421_v11  ;;  %v431_v19 = vpop.permute.xlu1 %430 }
  0x9e   :  { %v433_v20 = vunpack.i.h.bf16 %v431_v19  ;;  %v432_v21 = vunpack.i.l.bf16 %v431_v19 }
  0x9f   :  { %v398_v14 = vpack.c.bf16 %v423_v12, %v422_v13 }
  0xa0   :  { %v426_v15 = vpop.permute.xlu0 %425  ;;  %v404_v22 = vpack.c.bf16 %v433_v20, %v432_v21 }
  0xa1   :  { %v428_v16 = vunpack.i.h.bf16 %v426_v15  ;;  %v427_v17 = vunpack.i.l.bf16 %v426_v15  ;;  %399 = vmatpush3.bf16.msra.mxu1 %v398_v14  ;;  %v436_v23 = vpop.permute.xlu1 %435 }
  0xa2   :  { %400 = vmatprep.subr.bf16.mxu1 %v521_v0  ;;  %v438_v24 = vunpack.i.h.bf16 %v436_v23  ;;  %v437_v25 = vunpack.i.l.bf16 %v436_v23  ;;  %405 = vmatpush3.bf16.msra.mxu0 %v404_v22 }
  0xa3   :  { %v401_v18 = vpack.c.bf16 %v428_v16, %v427_v17  ;;  %406 = vmatprep.subr.bf16.mxu0 %v521_v0 }
  0xa4   :  { %v407_v27 = vpack.c.bf16 %v438_v24, %v437_v25  ;;  %v145_v31 = vpop.permute.xlu0 %144 }
  0xa5   :  { %402 = vmatpush3.bf16.msra.mxu1 %v401_v18  ;;  %v235_v36 = vpop.permute.xlu1 %234 }
  0xa6   :  { %408 = vmatpush3.bf16.msra.mxu0 %v407_v27 }
 0x100   :  { %v123_v26 = vpop.f32.mrb[0].mxu0 }
 0x101   :  { %v124_v28 = vadd.f32 %v348_v10, %v123_v26  ;;  %v371_v29 = vpop.f32.mrb[1].mxu0 }
 0x103   :  { %v127_v30 = vmax.f32 %v124_v28, 0.0 }
 0x105   :  { %381 = vmatmul.mubr.msk.f32.vlgmr.msra.gmra.mrb[0].mxu1 %vm147_vm2, %v127_v30 }
 0x1d8   :  { %v217_v32 = vpop.f32.mrb[0].mxu1 }
 0x1d9   :  { %v218_v33 = vadd.f32 %v217_v32, %v145_v31  ;;  %v382_v34 = vpop.f32.mrb[1].mxu1 }
 0x1db   :  { %v221_v35 = vmax.f32 %v218_v33, 0.0 }
 0x1dd   :  { %392 = vmatmul.mubr.msk.f32.vlgmr.msra.gmra.mrb[2].mxu0 %vm147_vm2, %v221_v35 }
 0x2b0   :  { %v306_v37 = vpop.f32.mrb[2].mxu0 }
 0x2b1   :  { %v307_v38 = vadd.f32 %v306_v37, %v235_v36  ;;  %v393_v39 = vpop.f32.mrb[3].mxu0 }
 0x2b3   :  { %v314_v40 = vand.u32 2147483647, %v307_v38  ;;  %v313_v53 = vmax.f32 %v307_v38, 0.0 }
 0x2b5   :  { %v315_v41 = vsub.f32 0.0, %v314_v40 }
 0x2b7   :  { %v316_v42 = vmul.f32 1.442695, %v315_v41 }
 0x2b9   :  { %439 = vpow2.f32 %v316_v42 }
 0x2c3   :  { %v440_v43 = vpop.eup %439 }
 0x2c4   :  { %v318_v44 = vadd.f32 1.0, %v440_v43  ;;  %v321_v45 = vmul.f32 -0.5, %v440_v43  ;;  %v324_v48 = vand.u32 2147483647, %v440_v43 }
 0x2c6   :  { %441 = vlog2.f32 %v318_v44  ;;  %v322_v47 = vadd.f32 1.0, %v321_v45  ;;  %vm325_vm3 = vcmp.lt.f32.partialorder %v324_v48, 0.0004427343 }
 0x2c7   :  { %443 = vtanh.f32 %v307_v38 }
 0x2c8   :  { %v323_v52 = vmul.f32 %v440_v43, %v322_v47 }
 0x2d0   :  { %v442_v50 = vpop.eup %441 }
 0x2d1   :  { %v320_v51 = vmul.f32 0.6931472, %v442_v50  ;;  %v444_v56 = vpop.eup %443 }
 0x2d3   :  { %v326_v54 = vsel %vm325_vm3, %v323_v52, %v320_v51 }
 0x2d4   :  { %v327_v55 = vadd.f32 %v326_v54, %v313_v53 }
 0x2d6   :  { %v329_v57 = vsel %vm328_vm4, %v444_v56, %v327_v55 }
 0x2d7   :  { %331 = vst.msk [vmem:[#allocation7] sm:$0xff] %vm330_vm5, %v329_v57 }
 0x2d8   :  { %500 = shalt.err (!%p497_p6)
}
 0x2d9   :  { %s501_s17 = scalar_lea.hbm %s599_s3, 128 }
 0x2da   :  { %p502_p7 = scmp.ne.s32.totalorder %s599_s3, %s501_s17  ;;  %p505_p8 = scmp.lt.u32.totalorder %s501_s17, %s599_s3 }
 0x2dc   :  { %p507_p9 = pnand %p505_p8, %p502_p7 }
 0x2de   :  { %510 = shalt.err (!%p507_p9)
}
 0x2df   :  { %341 = dma.vmem_to_hbm [thread:$0]  %s339_s13, 128, %s599_s3, [#allocation4]  }
 0x2e0   :  { %515 = dma.done.wait [#allocation4], 128  }
 0x2e1   :  { %516 = vsyncadd [#allocation4], 4294967168 }
 0x2e2   :  { %345 = vsyncpa [#allocation3], 1 }
 0x2e3   :  { %346 = vsyncpa [#allocation6], 1 }
 0x2e4   :  { %347 = vsyncpa [#allocation4], 1 }

</bundles_post_ra>
